<compile_context>
chip_gen: v5e
topology: v5e:2x2
jax: 0.10.0
libtpu: 0.0.40
codegen_flags: <defaults>
</compile_context>

<pallas_src>
import functools

import jax
import jax.numpy as jnp
from jax import lax
from jax.experimental import pallas as pl
from jax.experimental.pallas import tpu as pltpu

TAU = 0.1           # SupervisedContrastiveLoss tau (cancels; see wrapper docstring)
NTXENT_TEMP = 0.07  # NTXentLoss temperature

_EPS = 1e-12        # torch F.normalize eps
_EPS_SQ = 1e-24     # eps^2 for the rsqrt-based normalizations
_NEG_BIG = -1e30    # "minus infinity" that keeps max()/exp() finite
_LANE = 128


def _round_up(x, m):
    return ((x + m - 1) // m) * m


def _scl_kernel(lab_col_ref, lab_row_ref, f_hbm_ref, out_ref,
                fn_ref, le_ref, s_ref, m_ref, l_ref, loss_ref, cnt_ref, copy_sem,
                *, scale, n_real, tn):
    """Grid = (anchor-row blocks r, other-column blocks c); c iterates fastest.

    lab_col_ref : (Np, 1) int32   labels of every (padded) sample, column vector
    lab_row_ref : (1, tm) int32   labels of this anchor-row block
    f_hbm_ref   : (Np, D)         pre-L2-normalized features, left in HBM (pl.ANY)
    out_ref     : (1, 1)  f32     mean loss over all positive pairs

    fn_ref      : (Np, D)         VMEM copy of the features (single-buffered, one DMA)
    le_ref      : (Np, Np)        cached NTXent embeddings * sqrt(1/temp) (MXU dtype)
    s_ref       : (Np, tm) f32    similarity slab for the current row block (others x anchors)
    m_ref,l_ref : (1, tm)  f32    running negative max / rescaled exp-sum per anchor
    loss_ref / cnt_ref : (1, 1) f32   global accumulators
    """
    r = pl.program_id(0)
    c = pl.program_id(1)
    nr = pl.num_programs(0)
    nc = pl.num_programs(1)

    np_ = le_ref.shape[0]
    tm = s_ref.shape[1]
    neg_big = jnp.float32(_NEG_BIG)
    eps_sq = jnp.float32(_EPS_SQ)

    row0 = pl.multiple_of(r * tm, tm)
    col0 = pl.multiple_of(c * tn, tn)

    # ---- once: bring the pre-normalized features into VMEM, zero accumulators ----
    @pl.when(jnp.logical_and(r == 0, c == 0))
    def _init():
        cp = pltpu.make_async_copy(f_hbm_ref, fn_ref, copy_sem)
        cp.start()
        cp.wait()
        loss_ref[...] = jnp.zeros_like(loss_ref)
        cnt_ref[...] = jnp.zeros_like(cnt_ref)

    # ---- first row sweep only: build the embedding cache for column block c ------
    # le_k = normalize(fn_k @ fn.T) * sqrt(1/temp); the module's /tau cancels because
    # NTXent re-normalizes the logits rows (scale invariant).
    @pl.when(r == 0)
    def _fill_cache():
        f_col = fn_ref[pl.ds(col0, tn), :]                             # (tn, D)
        logits = lax.dot_general(f_col, fn_ref[...],
                                 (((1,), (1,)), ((), ())),
                                 preferred_element_type=jnp.float32)   # (tn, Np) f32
        inv = lax.rsqrt(jnp.maximum(
            jnp.sum(logits * logits, axis=1, keepdims=True), eps_sq))
        le_ref[pl.ds(col0, tn), :] = (logits * (inv * scale)).astype(le_ref.dtype)

    # ---- per anchor-row block: reset the running negative-softmax statistics -----
    @pl.when(c == 0)
    def _row_init():
        m_ref[...] = jnp.full(m_ref.shape, neg_big, jnp.float32)
        l_ref[...] = jnp.zeros_like(l_ref)

    # ---- every step: similarity block (others x anchors) on the MXU --------------
    le_col = le_ref[pl.ds(col0, tn), :]                                # (tn, Np)
    le_row = le_ref[pl.ds(row0, tm), :]                                # (tm, Np)
    s_blk = lax.dot_general(le_col, le_row,
                            (((1,), (1,)), ((), ())),
                            preferred_element_type=jnp.float32)        # (tn, tm), already /temp
    s_ref[pl.ds(col0, tn), :] = s_blk

    # ---- streaming (flash-style) negative max / exp-sum, hidden under the MXU ----
    lab_anchor = lab_row_ref[...]                                      # (1, tm)
    lab_other = lab_col_ref[pl.ds(col0, tn), :]                        # (tn, 1)
    kidx = col0 + lax.broadcasted_iota(jnp.int32, (tn, 1), 0)          # global "other" index
    neg = jnp.logical_and(lab_other != lab_anchor, kidx < n_real)      # (tn, tm)
    blk_max = jnp.max(jnp.where(neg, s_blk, neg_big), axis=0, keepdims=True)   # (1, tm)
    m_new = jnp.maximum(m_ref[...], blk_max)
    alpha = jnp.exp(m_ref[...] - m_new)
    p = jnp.where(neg, jnp.exp(s_blk - m_new), 0.0)
    l_ref[...] = l_ref[...] * alpha + jnp.sum(p, axis=0, keepdims=True)
    m_ref[...] = m_new

    # ---- last column block: positive-pair terms for this anchor-row block --------
    @pl.when(c == nc - 1)
    def _finalize_row_block():
        s = s_ref[...]                                                 # (Np, tm)
        same = lab_col_ref[...] == lab_row_ref[...]                    # (Np, tm)
        ki = lax.broadcasted_iota(jnp.int32, (np_, 1), 0)              # "other" index
        ai = row0 + lax.broadcasted_iota(jnp.int32, (1, tm), 1)        # anchor index
        pos = jnp.logical_and(
            jnp.logical_and(same, ki != ai),
            jnp.logical_and(ki < n_real, ai < n_real))
        # per positive pair: -log(exp(s)/(exp(s)+sum_neg exp)) = log(1 + l*exp(m - s))
        # (jnp.log1p would be marginally more accurate; log(1+x) keeps lowering simple)
        loss_e = jnp.where(pos,
                           jnp.log(1.0 + l_ref[...] * jnp.exp(m_ref[...] - s)),
                           0.0)
        loss_ref[...] = loss_ref[...] + jnp.sum(loss_e)
        cnt_ref[...] = cnt_ref[...] + jnp.sum(pos.astype(jnp.float32))

    # ---- very last grid step: emit the mean over all positive pairs --------------
    @pl.when(jnp.logical_and(r == nr - 1, c == nc - 1))
    def _emit():
        cnt = cnt_ref[...]
        out_ref[...] = jnp.where(cnt > 0.0,
                                 loss_ref[...] / jnp.maximum(cnt, 1.0),
                                 jnp.float32(0.0))


def _tpu_defaults():
    """(preferred tile size, VMEM capacity in bytes) for the current TPU generation."""
    vmem_cap = 64 * 1024 * 1024          # conservative default (v7x per-TensorCore)
    try:
        info = pltpu.get_tpu_info()
        vmem_cap = int(getattr(info, "vmem_capacity_bytes", vmem_cap))
    except Exception:
        pass
    kind = ""
    try:
        kind = jax.devices()[0].device_kind.lower()
    except Exception:
        pass
    # v5e's MXU is 4x128x128, so 128 tiles already fill it; v6e/v7x MXUs are 2x256x256.
    tile = 128 if "v5" in kind else 256
    return tile, vmem_cap


def supervised_contrastive_loss(features, labels, tau=TAU, temp=NTXENT_TEMP,
                                compute_dtype=jnp.bfloat16):
    """features: (N, D) float (any float dtype); labels: (N,) or (N, 1) int.

    Equivalent to SupervisedContrastiveLoss(tau).forward(features, labels).
    `tau` cancels exactly because NTXentLoss re-L2-normalizes the logits rows.
    `compute_dtype` sets the MXU operand dtype (bf16 by default; pass jnp.float32 for a
    bitwise-tighter result) -- all accumulation and elementwise math stays in f32.
    """
    del tau  # scale-invariant under NTXent's internal row normalization
    n, d = features.shape
    labels = jnp.asarray(labels).reshape(-1).astype(jnp.int32)

    # Hoisted feature L2-normalization (cheap O(N*D) XLA pass; removes the kernel's
    # cross-grid-step feature-normalization init of the previous version).
    f32 = features.astype(jnp.float32)
    fn = f32 / jnp.maximum(jnp.linalg.norm(f32, axis=1, keepdims=True), _EPS)
    fn = fn.astype(compute_dtype)

    tile_pref, vmem_cap = _tpu_defaults()
    np128 = _round_up(n, _LANE)
    if np128 <= tile_pref:
        tm = tn = np128                  # single block (small-N fast path, lane-dense)
    elif np128 % tile_pref == 0:
        tm = tn = tile_pref              # 256 on v6e/v7x, 128 on v5e
    else:
        tm = tn = 128
    np_ = np128
    assert tm == tn and np_ % tm == 0

    pad = np_ - n
    if pad:
        fn = jnp.pad(fn, ((0, pad), (0, 0)))
        labels = jnp.pad(labels, (0, pad))   # padded rows/cols are masked in-kernel
    lab_col = labels.reshape(np_, 1)
    lab_row = labels.reshape(1, np_)
    grid = (np_ // tm, np_ // tn)

    # VMEM budget derived from the actual resident buffers (review item), capped by chip.
    esz = jnp.dtype(compute_dtype).itemsize
    d_lanes = _round_up(d, _LANE)
    need = (np_ * d_lanes * esz          # fn scratch (single-buffered via manual DMA)
            + np_ * np_ * esz            # NTXent-embedding cache
            + np_ * tm * 4               # similarity slab
            + 2 * np_ * _LANE * 4        # (Np, 1) label input, double-buffered, lane-padded
            + 4 * 8 * tm * 4)            # running stats / scalar accumulators (tile-padded)
    if need + (8 << 20) > vmem_cap:
        # TODO(synk): add a non-cached fallback (recompute column embeddings per row block
        # / stream them from HBM) for batches whose (Np, Np) cache does not fit in VMEM.
        raise ValueError(
            f"batch of {n} samples needs ~{need >> 20} MiB of VMEM; exceeds the "
            f"~{vmem_cap >> 20} MiB available on this TPU")
    vmem_limit = int(min(need + (16 << 20), vmem_cap))

    kernel = functools.partial(
        _scl_kernel,
        scale=float(1.0 / temp) ** 0.5,   # sqrt(1/temp) folded into the cached embeddings
        n_real=n,
        tn=tn)

    out = pl.pallas_call(
        kernel,
        grid_spec=pltpu.PrefetchScalarGridSpec(
            num_scalar_prefetch=0,
            grid=grid,
            in_specs=[
                pl.BlockSpec((np_, 1), lambda r, c: (0, 0)),   # all labels (column vector)
                pl.BlockSpec((1, tm), lambda r, c: (0, r)),    # anchor-block labels (row)
                pl.BlockSpec(memory_space=pl.ANY),             # features stay in HBM; 1 DMA
            ],
            out_specs=pl.BlockSpec((1, 1), lambda r, c: (0, 0)),
            scratch_shapes=[
                pltpu.VMEM((np_, d), compute_dtype),    # normalized features (single buffer)
                pltpu.VMEM((np_, np_), compute_dtype),  # NTXent embedding cache
                pltpu.VMEM((np_, tm), jnp.float32),     # similarity slab (others x anchors)
                pltpu.VMEM((1, tm), jnp.float32),       # running negative max
                pltpu.VMEM((1, tm), jnp.float32),       # running negative exp-sum
                pltpu.VMEM((1, 1), jnp.float32),        # loss-sum accumulator
                pltpu.VMEM((1, 1), jnp.float32),        # positive-pair count accumulator
                pltpu.SemaphoreType.DMA,                # feature-copy semaphore
            ],
        ),
        out_shape=jax.ShapeDtypeStruct((1, 1), jnp.float32),
        compiler_params=pltpu.CompilerParams(
            # The (Np, Np) embedding cache is filled during the r == 0 sweep and reused by
            # every later row block, so the grid must stay sequential.
            # TODO(synk): on v7x (2 TensorCores), precompute/pass the cache and emit
            # per-row-block partial sums so the row axis can be marked "parallel".
            dimension_semantics=("arbitrary", "arbitrary"),
            vmem_limit_bytes=vmem_limit,
        ),
    )(lab_col, lab_row, fn)
    return out[0, 0]


def _reference(features, labels, tau=TAU, temp=NTXENT_TEMP):
    """Pure-JAX f32 reference mirroring torch + pytorch_metric_learning semantics."""
    eps = 1e-12
    tiny = jnp.finfo(jnp.float32).tiny
    f = features.astype(jnp.float32)
    fn = f / jnp.maximum(jnp.linalg.norm(f, axis=1, keepdims=True), eps)
    logits = (fn @ fn.T) / tau
    le = logits / jnp.maximum(jnp.linalg.norm(logits, axis=1, keepdims=True), eps)
    s = (le @ le.T) / temp
    lab = labels.reshape(-1, 1).astype(jnp.int32)
    same = lab == lab.T
    n = f.shape[0]
    eye = jnp.eye(n, dtype=bool)
    pos_mask = same & (~eye)
    neg_mask = ~same
    s_neg = jnp.where(neg_mask, s, -jnp.inf)
    row_neg_max = jnp.max(s_neg, axis=1, keepdims=True)
    has_neg = jnp.any(neg_mask, axis=1, keepdims=True)
    rnm_safe = jnp.where(has_neg, row_neg_max, 0.0)
    A = jnp.sum(jnp.where(neg_mask, jnp.exp(s - rnm_safe), 0.0), axis=1, keepdims=True)
    m = jnp.maximum(s, row_neg_max)
    num = jnp.exp(s - m)
    neg_sum = jnp.where(has_neg, jnp.exp(rnm_safe - m), 0.0) * A
    loss_mat = -jnp.log(num / (num + neg_sum) + tiny)
    cnt = jnp.sum(pos_mask)
    return jnp.where(cnt > 0,
                     jnp.sum(jnp.where(pos_mask, loss_mat, 0.0)) / jnp.maximum(cnt, 1),
                     0.0)


if __name__ == "__main__":
    key = jax.random.PRNGKey(0)

    # Test 1: tiny single-block case (module-scale toy shapes).
    N, D = 8, 32
    kf, kl = jax.random.split(key)
    features = jax.random.normal(kf, (N, D), dtype=jnp.float32)
    labels = jnp.array([[0], [1], [0], [2], [1], [0], [2], [1]], dtype=jnp.int32)
    ref = _reference(features, labels)

    loss_bf16 = jax.block_until_ready(supervised_contrastive_loss(features, labels))
    assert jnp.isfinite(loss_bf16), "bf16 loss is not finite"
    assert jnp.allclose(loss_bf16, ref, rtol=2e-2, atol=2e-2), (loss_bf16, ref)

    loss_f32 = jax.block_until_ready(
        supervised_contrastive_loss(features, labels, compute_dtype=jnp.float32))
    assert jnp.allclose(loss_f32, ref, rtol=1e-3, atol=1e-3), (loss_f32, ref)

    # Test 2: multi-block + padded case exercising the tiled path and the VMEM cache.
    N2, D2 = 300, 48
    k2f, k2l = jax.random.split(kl)
    f2 = jax.random.normal(k2f, (N2, D2), dtype=jnp.float32)
    l2 = jax.random.randint(k2l, (N2,), 0, 7, dtype=jnp.int32)
    ref2 = _reference(f2, l2)

    loss2_bf16 = jax.block_until_ready(supervised_contrastive_loss(f2, l2))
    assert jnp.isfinite(loss2_bf16), "tiled bf16 loss is not finite"
    assert jnp.allclose(loss2_bf16, ref2, rtol=2e-2, atol=2e-2), (loss2_bf16, ref2)

    loss2_f32 = jax.block_until_ready(
        supervised_contrastive_loss(f2, l2, compute_dtype=jnp.float32))
    assert jnp.allclose(loss2_f32, ref2, rtol=1e-3, atol=1e-3), (loss2_f32, ref2)

    print("KERNEL_OK")
</pallas_src>

<mosaic_0001>
module attributes {stable_mosaic.version = 11 : i64} {
  func.func @_scl_kernel(%arg0: i32, %arg1: i32, %arg2: memref<128x1xi32, #tpu.memory_space<vmem>>, %arg3: memref<1x128xi32, #tpu.memory_space<vmem>>, %arg4: memref<128x32xbf16, #tpu.memory_space<any>>, %arg5: memref<1x1xf32, #tpu.memory_space<vmem>>, %arg6: memref<128x32xbf16, #tpu.memory_space<vmem>>, %arg7: memref<128x128xbf16, #tpu.memory_space<vmem>>, %arg8: memref<128x128xf32, #tpu.memory_space<vmem>>, %arg9: memref<1x128xf32, #tpu.memory_space<vmem>>, %arg10: memref<1x128xf32, #tpu.memory_space<vmem>>, %arg11: memref<1x1xf32, #tpu.memory_space<vmem>>, %arg12: memref<1x1xf32, #tpu.memory_space<vmem>>, %arg13: memref<!tpu.dma_semaphore, #tpu.memory_space<semaphore_mem>>) attributes {dimension_semantics = [#tpu.dimension_semantics<arbitrary>, #tpu.dimension_semantics<arbitrary>], iteration_bounds = array<i64: 1, 1>, scalar_prefetch = 0 : i64, scratch_operands = 8 : i64, tpu.core_type = #tpu.core_type<tc>, window_params = [{pipeline_mode = #tpu.pipeline_mode<synchronous>, transform_indices = @transform_0, window_bounds = array<i64: 128, 1>}, {transform_indices = @transform_1, window_bounds = array<i64: 1, 128>}, {}, {pipeline_mode = #tpu.pipeline_mode<synchronous>, transform_indices = @transform_3, window_bounds = array<i64: 1, 1>}]} {
    %c128_i32 = arith.constant 128 : i32
    %0 = arith.muli %arg0, %c128_i32 : i32
    %1 = tpu.assume_multiple %0, 128 : i32
    %c128_i32_0 = arith.constant 128 : i32
    %2 = arith.muli %arg1, %c128_i32_0 : i32
    %3 = tpu.assume_multiple %2, 128 : i32
    %c0_i32 = arith.constant 0 : i32
    %4 = arith.cmpi eq, %arg0, %c0_i32 : i32
    %c0_i32_1 = arith.constant 0 : i32
    %5 = arith.cmpi eq, %arg1, %c0_i32_1 : i32
    %6 = arith.andi %4, %5 : i1
    %7 = arith.extui %6 : i1 to i32
    %c0_i32_2 = arith.constant 0 : i32
    %8 = arith.cmpi ne, %7, %c0_i32_2 : i32
    scf.if %8 {
      tpu.enqueue_dma source(%arg4 : memref<128x32xbf16, #tpu.memory_space<any>>) target(%arg6 : memref<128x32xbf16, #tpu.memory_space<vmem>>) target_semaphore(%arg13 : memref<!tpu.dma_semaphore, #tpu.memory_space<semaphore_mem>>)
      tpu.wait_dma2 semaphore(%arg13 : memref<!tpu.dma_semaphore, #tpu.memory_space<semaphore_mem>>) src(%arg4 : memref<128x32xbf16, #tpu.memory_space<any>>) dst(%arg6 : memref<128x32xbf16, #tpu.memory_space<vmem>>)
      %cst_33 = arith.constant 0.000000e+00 : f32
      %64 = vector.broadcast %cst_33 : f32 to vector<1x1xf32>
      %c0_34 = arith.constant 0 : index
      %c0_35 = arith.constant 0 : index
      %65 = vector.load %arg11[%c0_34, %c0_35] : memref<1x1xf32, #tpu.memory_space<vmem>>, vector<1x1xf32>
      tpu.vector_store %arg11[%c0_34, %c0_35], %64 {strides = array<i32>} : memref<1x1xf32, #tpu.memory_space<vmem>>, vector<1x1xf32>,
      %cst_36 = arith.constant 0.000000e+00 : f32
      %66 = vector.broadcast %cst_36 : f32 to vector<1x1xf32>
      %c0_37 = arith.constant 0 : index
      %c0_38 = arith.constant 0 : index
      %67 = vector.load %arg12[%c0_37, %c0_38] : memref<1x1xf32, #tpu.memory_space<vmem>>, vector<1x1xf32>
      tpu.vector_store %arg12[%c0_37, %c0_38], %66 {strides = array<i32>} : memref<1x1xf32, #tpu.memory_space<vmem>>, vector<1x1xf32>,
    } else {
    }
    %c0_i32_3 = arith.constant 0 : i32
    %9 = arith.cmpi eq, %arg0, %c0_i32_3 : i32
    %10 = arith.extui %9 : i1 to i32
    %cst = arith.constant 1.000000e-24 : f32
    %c0_i32_4 = arith.constant 0 : i32
    %11 = arith.cmpi ne, %10, %c0_i32_4 : i32
    scf.if %11 {
      %64 = arith.index_cast %3 : i32 to index
      %c0_33 = arith.constant 0 : index
      %65 = vector.load %arg6[%64, %c0_33] : memref<128x32xbf16, #tpu.memory_space<vmem>>, vector<128x32xbf16>
      %c0_34 = arith.constant 0 : index
      %c0_35 = arith.constant 0 : index
      %66 = vector.load %arg6[%c0_34, %c0_35] : memref<128x32xbf16, #tpu.memory_space<vmem>>, vector<128x32xbf16>
      %cst_36 = arith.constant dense<0.000000e+00> : vector<128x128xf32>
      %67 = tpu.matmul %65, %66, %cst_36 {dimension_numbers = #tpu.dot_dimension_numbers<[1], [1], [0], [0], [0, 0, 1, 0], [], []>} : vector<128x32xbf16>, vector<128x32xbf16>, vector<128x128xf32> -> vector<128x128xf32>
      %68 = arith.mulf %67, %67 : vector<128x128xf32>
      %cst_37 = arith.constant dense<0.000000e+00> : vector<128xf32>
      %69 = vector.multi_reduction <add>, %68, %cst_37 [1] : vector<128x128xf32> to vector<128xf32>
      %70 = vector.shape_cast %69 : vector<128xf32> to vector<128x1xf32>
      %71 = vector.broadcast %cst : f32 to vector<128x1xf32>
      %72 = arith.maximumf %70, %71 : vector<128x1xf32>
      %73 = math.rsqrt %72 : vector<128x1xf32>
      %cst_38 = arith.constant 3.77964473 : f32
      %74 = vector.broadcast %cst_38 : f32 to vector<128x1xf32>
      %75 = arith.mulf %73, %74 : vector<128x1xf32>
      %76 = vector.broadcast %75 : vector<128x1xf32> to vector<128x128xf32>
      %77 = arith.mulf %67, %76 : vector<128x128xf32>
      %78 = arith.truncf %77 : vector<128x128xf32> to vector<128x128xbf16>
      %79 = arith.index_cast %3 : i32 to index
      %c0_39 = arith.constant 0 : index
      %80 = vector.load %arg7[%79, %c0_39] : memref<128x128xbf16, #tpu.memory_space<vmem>>, vector<128x128xbf16>
      tpu.vector_store %arg7[%79, %c0_39], %78 {strides = array<i32>} : memref<128x128xbf16, #tpu.memory_space<vmem>>, vector<128x128xbf16>,
    } else {
    }
    %c0_i32_5 = arith.constant 0 : i32
    %12 = arith.cmpi eq, %arg1, %c0_i32_5 : i32
    %13 = arith.extui %12 : i1 to i32
    %cst_6 = arith.constant -1.000000e+30 : f32
    %c0_i32_7 = arith.constant 0 : i32
    %14 = arith.cmpi ne, %13, %c0_i32_7 : i32
    scf.if %14 {
      %64 = vector.broadcast %cst_6 : f32 to vector<1x128xf32>
      %c0_33 = arith.constant 0 : index
      %c0_34 = arith.constant 0 : index
      %65 = vector.load %arg9[%c0_33, %c0_34] : memref<1x128xf32, #tpu.memory_space<vmem>>, vector<1x128xf32>
      tpu.vector_store %arg9[%c0_33, %c0_34], %64 {strides = array<i32>} : memref<1x128xf32, #tpu.memory_space<vmem>>, vector<1x128xf32>,
      %cst_35 = arith.constant 0.000000e+00 : f32
      %66 = vector.broadcast %cst_35 : f32 to vector<1x128xf32>
      %c0_36 = arith.constant 0 : index
      %c0_37 = arith.constant 0 : index
      %67 = vector.load %arg10[%c0_36, %c0_37] : memref<1x128xf32, #tpu.memory_space<vmem>>, vector<1x128xf32>
      tpu.vector_store %arg10[%c0_36, %c0_37], %66 {strides = array<i32>} : memref<1x128xf32, #tpu.memory_space<vmem>>, vector<1x128xf32>,
    } else {
    }
    %15 = arith.index_cast %3 : i32 to index
    %c0 = arith.constant 0 : index
    %16 = vector.load %arg7[%15, %c0] : memref<128x128xbf16, #tpu.memory_space<vmem>>, vector<128x128xbf16>
    %17 = arith.index_cast %1 : i32 to index
    %c0_8 = arith.constant 0 : index
    %18 = vector.load %arg7[%17, %c0_8] : memref<128x128xbf16, #tpu.memory_space<vmem>>, vector<128x128xbf16>
    %cst_9 = arith.constant dense<0.000000e+00> : vector<128x128xf32>
    %19 = tpu.matmul %16, %18, %cst_9 {dimension_numbers = #tpu.dot_dimension_numbers<[1], [1], [0], [0], [0, 0, 1, 0], [], []>} : vector<128x128xbf16>, vector<128x128xbf16>, vector<128x128xf32> -> vector<128x128xf32>
    %20 = arith.index_cast %3 : i32 to index
    %c0_10 = arith.constant 0 : index
    %21 = vector.load %arg8[%20, %c0_10] : memref<128x128xf32, #tpu.memory_space<vmem>>, vector<128x128xf32>
    tpu.vector_store %arg8[%20, %c0_10], %19 {strides = array<i32>} : memref<128x128xf32, #tpu.memory_space<vmem>>, vector<128x128xf32>,
    %c0_11 = arith.constant 0 : index
    %c0_12 = arith.constant 0 : index
    %22 = vector.load %arg3[%c0_11, %c0_12] : memref<1x128xi32, #tpu.memory_space<vmem>>, vector<1x128xi32>
    %23 = arith.index_cast %3 : i32 to index
    %c0_13 = arith.constant 0 : index
    %24 = vector.load %arg2[%23, %c0_13] : memref<128x1xi32, #tpu.memory_space<vmem>>, vector<128x1xi32>
    %25 = tpu.iota {dimensions = array<i32: 0>} : vector<128x1xi32>
    %26 = vector.broadcast %3 : i32 to vector<128x1xi32>
    %27 = arith.addi %26, %25 : vector<128x1xi32>
    %28 = vector.broadcast %24 : vector<128x1xi32> to vector<128x128xi32>
    %29 = vector.broadcast %22 : vector<1x128xi32> to vector<128x128xi32>
    %30 = arith.cmpi ne, %28, %29 : vector<128x128xi32>
    %c8_i32 = arith.constant 8 : i32
    %31 = vector.broadcast %c8_i32 : i32 to vector<128x1xi32>
    %32 = arith.cmpi slt, %27, %31 : vector<128x1xi32>
    %33 = vector.broadcast %32 : vector<128x1xi1> to vector<128x128xi1>
    %34 = arith.andi %30, %33 : vector<128x128xi1>
    %cst_14 = arith.constant -1.000000e+30 : f32
    %35 = vector.broadcast %cst_14 : f32 to vector<128x128xf32>
    %36 = arith.select %34, %19, %35 : vector<128x128xi1>, vector<128x128xf32>
    %cst_15 = arith.constant dense<0xFF800000> : vector<128xf32>
    %37 = vector.multi_reduction <maximumf>, %36, %cst_15 [0] : vector<128x128xf32> to vector<128xf32>
    %38 = vector.shape_cast %37 : vector<128xf32> to vector<1x128xf32>
    %c0_16 = arith.constant 0 : index
    %c0_17 = arith.constant 0 : index
    %39 = vector.load %arg9[%c0_16, %c0_17] : memref<1x128xf32, #tpu.memory_space<vmem>>, vector<1x128xf32>
    %40 = arith.maximumf %39, %38 : vector<1x128xf32>
    %c0_18 = arith.constant 0 : index
    %c0_19 = arith.constant 0 : index
    %41 = vector.load %arg9[%c0_18, %c0_19] : memref<1x128xf32, #tpu.memory_space<vmem>>, vector<1x128xf32>
    %42 = arith.subf %41, %40 : vector<1x128xf32>
    %43 = math.exp %42 : vector<1x128xf32>
    %44 = vector.broadcast %40 : vector<1x128xf32> to vector<128x128xf32>
    %45 = arith.subf %19, %44 : vector<128x128xf32>
    %46 = math.exp %45 : vector<128x128xf32>
    %cst_20 = arith.constant 0.000000e+00 : f32
    %47 = vector.broadcast %cst_20 : f32 to vector<128x128xf32>
    %48 = arith.select %34, %46, %47 : vector<128x128xi1>, vector<128x128xf32>
    %c0_21 = arith.constant 0 : index
    %c0_22 = arith.constant 0 : index
    %49 = vector.load %arg10[%c0_21, %c0_22] : memref<1x128xf32, #tpu.memory_space<vmem>>, vector<1x128xf32>
    %50 = arith.mulf %49, %43 : vector<1x128xf32>
    %cst_23 = arith.constant dense<0.000000e+00> : vector<128xf32>
    %51 = vector.multi_reduction <add>, %48, %cst_23 [0] : vector<128x128xf32> to vector<128xf32>
    %52 = vector.shape_cast %51 : vector<128xf32> to vector<1x128xf32>
    %53 = arith.addf %50, %52 : vector<1x128xf32>
    %c0_24 = arith.constant 0 : index
    %c0_25 = arith.constant 0 : index
    %54 = vector.load %arg10[%c0_24, %c0_25] : memref<1x128xf32, #tpu.memory_space<vmem>>, vector<1x128xf32>
    tpu.vector_store %arg10[%c0_24, %c0_25], %53 {strides = array<i32>} : memref<1x128xf32, #tpu.memory_space<vmem>>, vector<1x128xf32>,
    %c0_26 = arith.constant 0 : index
    %c0_27 = arith.constant 0 : index
    %55 = vector.load %arg9[%c0_26, %c0_27] : memref<1x128xf32, #tpu.memory_space<vmem>>, vector<1x128xf32>
    tpu.vector_store %arg9[%c0_26, %c0_27], %40 {strides = array<i32>} : memref<1x128xf32, #tpu.memory_space<vmem>>, vector<1x128xf32>,
    %c0_i32_28 = arith.constant 0 : i32
    %56 = arith.cmpi eq, %arg1, %c0_i32_28 : i32
    %57 = arith.extui %56 : i1 to i32
    %c0_i32_29 = arith.constant 0 : i32
    %58 = arith.cmpi ne, %57, %c0_i32_29 : i32
    scf.if %58 {
      %c0_33 = arith.constant 0 : index
      %c0_34 = arith.constant 0 : index
      %64 = vector.load %arg8[%c0_33, %c0_34] : memref<128x128xf32, #tpu.memory_space<vmem>>, vector<128x128xf32>
      %c0_35 = arith.constant 0 : index
      %c0_36 = arith.constant 0 : index
      %65 = vector.load %arg2[%c0_35, %c0_36] : memref<128x1xi32, #tpu.memory_space<vmem>>, vector<128x1xi32>
      %c0_37 = arith.constant 0 : index
      %c0_38 = arith.constant 0 : index
      %66 = vector.load %arg3[%c0_37, %c0_38] : memref<1x128xi32, #tpu.memory_space<vmem>>, vector<1x128xi32>
      %67 = vector.broadcast %65 : vector<128x1xi32> to vector<128x128xi32>
      %68 = vector.broadcast %66 : vector<1x128xi32> to vector<128x128xi32>
      %69 = arith.cmpi eq, %67, %68 : vector<128x128xi32>
      %70 = tpu.iota {dimensions = array<i32: 0>} : vector<128x1xi32>
      %71 = tpu.iota {dimensions = array<i32: 1>} : vector<1x128xi32>
      %72 = vector.broadcast %1 : i32 to vector<1x128xi32>
      %73 = arith.addi %72, %71 : vector<1x128xi32>
      %74 = vector.broadcast %70 : vector<128x1xi32> to vector<128x128xi32>
      %75 = vector.broadcast %73 : vector<1x128xi32> to vector<128x128xi32>
      %76 = arith.cmpi ne, %74, %75 : vector<128x128xi32>
      %77 = arith.andi %69, %76 : vector<128x128xi1>
      %c8_i32_39 = arith.constant 8 : i32
      %78 = vector.broadcast %c8_i32_39 : i32 to vector<128x1xi32>
      %79 = arith.cmpi slt, %70, %78 : vector<128x1xi32>
      %c8_i32_40 = arith.constant 8 : i32
      %80 = vector.broadcast %c8_i32_40 : i32 to vector<1x128xi32>
      %81 = arith.cmpi slt, %73, %80 : vector<1x128xi32>
      %82 = vector.broadcast %79 : vector<128x1xi1> to vector<128x128xi1>
      %83 = vector.broadcast %81 : vector<1x128xi1> to vector<128x128xi1>
      %84 = arith.andi %82, %83 : vector<128x128xi1>
      %85 = arith.andi %77, %84 : vector<128x128xi1>
      %c0_41 = arith.constant 0 : index
      %c0_42 = arith.constant 0 : index
      %86 = vector.load %arg10[%c0_41, %c0_42] : memref<1x128xf32, #tpu.memory_space<vmem>>, vector<1x128xf32>
      %c0_43 = arith.constant 0 : index
      %c0_44 = arith.constant 0 : index
      %87 = vector.load %arg9[%c0_43, %c0_44] : memref<1x128xf32, #tpu.memory_space<vmem>>, vector<1x128xf32>
      %88 = vector.broadcast %87 : vector<1x128xf32> to vector<128x128xf32>
      %89 = arith.subf %88, %64 : vector<128x128xf32>
      %90 = math.exp %89 : vector<128x128xf32>
      %91 = vector.broadcast %86 : vector<1x128xf32> to vector<128x128xf32>
      %92 = arith.mulf %91, %90 : vector<128x128xf32>
      %cst_45 = arith.constant 1.000000e+00 : f32
      %93 = vector.broadcast %cst_45 : f32 to vector<128x128xf32>
      %94 = arith.addf %93, %92 : vector<128x128xf32>
      %95 = math.log %94 : vector<128x128xf32>
      %cst_46 = arith.constant 0.000000e+00 : f32
      %96 = vector.broadcast %cst_46 : f32 to vector<128x128xf32>
      %97 = arith.select %85, %95, %96 : vector<128x128xi1>, vector<128x128xf32>
      %c0_47 = arith.constant 0 : index
      %c0_48 = arith.constant 0 : index
      %98 = vector.load %arg11[%c0_47, %c0_48] : memref<1x1xf32, #tpu.memory_space<vmem>>, vector<1x1xf32>
      %99 = vector.shape_cast %97 : vector<128x128xf32> to vector<1x128x128xf32>
      %cst_49 = arith.constant dense<0.000000e+00> : vector<1xf32>
      %100 = vector.multi_reduction <add>, %99, %cst_49 [1, 2] : vector<1x128x128xf32> to vector<1xf32>
      %101 = vector.shape_cast %100 : vector<1xf32> to vector<1x1x1xf32>
      %102 = vector.extract %101[0, 0, 0] : f32 from vector<1x1x1xf32>
      %103 = vector.broadcast %102 : f32 to vector<1x1xf32>
      %104 = arith.addf %98, %103 : vector<1x1xf32>
      %c0_50 = arith.constant 0 : index
      %c0_51 = arith.constant 0 : index
      %105 = vector.load %arg11[%c0_50, %c0_51] : memref<1x1xf32, #tpu.memory_space<vmem>>, vector<1x1xf32>
      tpu.vector_store %arg11[%c0_50, %c0_51], %104 {strides = array<i32>} : memref<1x1xf32, #tpu.memory_space<vmem>>, vector<1x1xf32>,
      %c0_52 = arith.constant 0 : index
      %c0_53 = arith.constant 0 : index
      %106 = vector.load %arg12[%c0_52, %c0_53] : memref<1x1xf32, #tpu.memory_space<vmem>>, vector<1x1xf32>
      %107 = arith.extui %85 : vector<128x128xi1> to vector<128x128xi32>
      %108 = arith.sitofp %107 : vector<128x128xi32> to vector<128x128xf32>
      %109 = vector.shape_cast %108 : vector<128x128xf32> to vector<1x128x128xf32>
      %cst_54 = arith.constant dense<0.000000e+00> : vector<1xf32>
      %110 = vector.multi_reduction <add>, %109, %cst_54 [1, 2] : vector<1x128x128xf32> to vector<1xf32>
      %111 = vector.shape_cast %110 : vector<1xf32> to vector<1x1x1xf32>
      %112 = vector.extract %111[0, 0, 0] : f32 from vector<1x1x1xf32>
      %113 = vector.broadcast %112 : f32 to vector<1x1xf32>
      %114 = arith.addf %106, %113 : vector<1x1xf32>
      %c0_55 = arith.constant 0 : index
      %c0_56 = arith.constant 0 : index
      %115 = vector.load %arg12[%c0_55, %c0_56] : memref<1x1xf32, #tpu.memory_space<vmem>>, vector<1x1xf32>
      tpu.vector_store %arg12[%c0_55, %c0_56], %114 {strides = array<i32>} : memref<1x1xf32, #tpu.memory_space<vmem>>, vector<1x1xf32>,
    } else {
    }
    %c0_i32_30 = arith.constant 0 : i32
    %59 = arith.cmpi eq, %arg0, %c0_i32_30 : i32
    %c0_i32_31 = arith.constant 0 : i32
    %60 = arith.cmpi eq, %arg1, %c0_i32_31 : i32
    %61 = arith.andi %59, %60 : i1
    %62 = arith.extui %61 : i1 to i32
    %c0_i32_32 = arith.constant 0 : i32
    %63 = arith.cmpi ne, %62, %c0_i32_32 : i32
    scf.if %63 {
      %c0_33 = arith.constant 0 : index
      %c0_34 = arith.constant 0 : index
      %64 = vector.load %arg12[%c0_33, %c0_34] : memref<1x1xf32, #tpu.memory_space<vmem>>, vector<1x1xf32>
      %cst_35 = arith.constant 0.000000e+00 : f32
      %65 = vector.broadcast %cst_35 : f32 to vector<1x1xf32>
      %66 = arith.cmpf ogt, %64, %65 : vector<1x1xf32>
      %c0_36 = arith.constant 0 : index
      %c0_37 = arith.constant 0 : index
      %67 = vector.load %arg11[%c0_36, %c0_37] : memref<1x1xf32, #tpu.memory_space<vmem>>, vector<1x1xf32>
      %cst_38 = arith.constant 1.000000e+00 : f32
      %68 = vector.broadcast %cst_38 : f32 to vector<1x1xf32>
      %69 = arith.maximumf %64, %68 : vector<1x1xf32>
      %70 = arith.divf %67, %69 : vector<1x1xf32>
      %cst_39 = arith.constant 0.000000e+00 : f32
      %71 = vector.broadcast %cst_39 : f32 to vector<1x1xf32>
      %72 = arith.select %66, %70, %71 : vector<1x1xi1>, vector<1x1xf32>
      %c0_40 = arith.constant 0 : index
      %c0_41 = arith.constant 0 : index
      %73 = vector.load %arg5[%c0_40, %c0_41] : memref<1x1xf32, #tpu.memory_space<vmem>>, vector<1x1xf32>
      tpu.vector_store %arg5[%c0_40, %c0_41], %72 {strides = array<i32>} : memref<1x1xf32, #tpu.memory_space<vmem>>, vector<1x1xf32>,
    } else {
    }
    return
  }
  func.func @transform_0(%arg0: i32, %arg1: i32) -> (i32, i32) {
    %c0_i32 = arith.constant 0 : i32
    %c0_i32_0 = arith.constant 0 : i32
    %c0_i32_1 = arith.constant 0 : i32
    return %c0_i32, %c0_i32_0 : i32, i32
  }
  func.func @transform_1(%arg0: i32, %arg1: i32) -> (i32, i32) {
    %c0_i32 = arith.constant 0 : i32
    %c0_i32_0 = arith.constant 0 : i32
    return %c0_i32, %arg0 : i32, i32
  }
  func.func @transform_3(%arg0: i32, %arg1: i32) -> (i32, i32) {
    %c0_i32 = arith.constant 0 : i32
    %c0_i32_0 = arith.constant 0 : i32
    %c0_i32_1 = arith.constant 0 : i32
    return %c0_i32, %c0_i32_0 : i32, i32
  }
}

</mosaic_0001>

<bundles_post_ra>
// kernel: tpu_custom_call.1
= control target key start
LH: loop header
LB: loop body
LE: loop exit
PB: predicated region body
PF: predicated region fallthrough
CT: control target
= control target key end

     0   :  { %8 = vsyncpa [#allocation11], 0  ;;  %s2207_s0 = inlined_call_operand.vmem [shape: s32[128,1], index: 0, kind: input, shape index: {}]   ;;  %s2208_s1 = inlined_call_operand.vmem [shape: s32[1,128], index: 1, kind: input, shape index: {}]   ;;  %s2209_s2 = inlined_call_operand.vmem [shape: bf16[128,32], index: 2, kind: input, shape index: {}]   ;;  %s2210_s3 = inlined_call_operand.hbm [shape: f32[1,1], index: 3, kind: output, shape index: {}]  }
   0x1   :  { %v31_v0 = vld [vmem:[%s2209_s2] sm:$0xff]  ;;  %v33_v1 = vld [vmem:[%s2209_s2 + $0x8] sm:$0xff]  ;;  %v35_v2 = vld [vmem:[%s2209_s2 + $0x10] sm:$0xff] }
   0x2   :  { %32 = vst [vmem:[#allocation2 + $0x30] sm:$0xff] %v31_v0  ;;  %v37_v3 = vld [vmem:[%s2209_s2 + $0x18] sm:$0xff]  ;;  %v39_v4 = vld [vmem:[%s2209_s2 + $0x20] sm:$0xff]  ;;  %v41_v5 = vld [vmem:[%s2209_s2 + $0x28] sm:$0xff] }
   0x3   :  { %34 = vst [vmem:[#allocation2] sm:$0xff] %v33_v1  ;;  %v43_v6 = vld [vmem:[%s2209_s2 + $0x30] sm:$0xff]  ;;  %v45_v7 = vld [vmem:[%s2209_s2 + $0x38] sm:$0xff] }
   0x4   :  { %36 = vst [vmem:[#allocation2 + $0x18] sm:$0xff] %v35_v2 }
   0x5   :  { %38 = vst [vmem:[#allocation2 + $0x10] sm:$0xff] %v37_v3 }
   0x6   :  { %40 = vst [vmem:[#allocation2 + $0x8] sm:$0xff] %v39_v4 }
   0x7   :  { %42 = vst [vmem:[#allocation2 + $0x20] sm:$0xff] %v41_v5 }
   0x8   :  { %44 = vst [vmem:[#allocation2 + $0x28] sm:$0xff] %v43_v6 }
   0x9   :  { %46 = vst [vmem:[#allocation2 + $0x38] sm:$0xff] %v45_v7 }
   0xa   :  { %52 = vsyncadd [#allocation9], 1024 }
   0xb   :  { %1907 = dma.done.wait [#allocation9], 1024 }
   0xc   :  { %1908 = vsyncadd [#allocation9], 4294966272  ;;  %vm179_vm0 = vcmask 261120   ;;  %v1742_v16 = vld [vmem:[#allocation2 + $0x10] sm:$0xff]  ;;  %v1741_v18 = vld [vmem:[#allocation2 + $0x18] sm:$0xff]  ;;  %s1914_s6 = smov [#allocation10]  }
   0xd   :  { %v1743_v14 = vld [vmem:[#allocation2 + $0x8] sm:$0xff]  ;;  %v214_v17 = vsel %vm179_vm0, %v1742_v16, 0  ;;  %v211_v19 = vsel %vm179_vm0, %v1741_v18, 0  ;;  %v1740_v20 = vld [vmem:[#allocation2] sm:$0xff]  ;;  %v1739_v22 = vld [vmem:[#allocation2 + $0x30] sm:$0xff]  ;;  %s1564_s7 = sshll.u32 %s1914_s6, 4  ;;  %s1565_s7 = int_to_ptr.vmem [resolvable:$true] %s1564_s7 }
   0xe   :  { %v1744_v12 = vld [vmem:[#allocation2 + $0x20] sm:$0xff]  ;;  %v217_v15 = vsel %vm179_vm0, %v1743_v14, 0  ;;  %v208_v21 = vsel %vm179_vm0, %v1740_v20, 0  ;;  %v205_v23 = vsel %vm179_vm0, %v1739_v22, 0  ;;  %v1731_v24 = vld [vmem:[#allocation2 + $0x30] sm:$0xff]  ;;  %v1735_v25 = vld [vmem:[#allocation2 + $0x8] sm:$0xff] }
   0xf   :  { %v1745_v10 = vld [vmem:[#allocation2 + $0x28] sm:$0xff]  ;;  %v220_v13 = vsel %vm179_vm0, %v1744_v12, 0  ;;  %v1732_v26 = vld [vmem:[#allocation2] sm:$0xff]  ;;  %v1733_v28 = vld [vmem:[#allocation2 + $0x18] sm:$0xff]  ;;  %s1566_s10 = sshll.u32 %s2210_s3, 4  ;;  %s1567_s10 = int_to_ptr.hbm [resolvable:$true] %s1566_s10 }
  0x10   :  { %v1746_v8 = vld [vmem:[#allocation2 + $0x38] sm:$0xff]  ;;  %v223_v11 = vsel %vm179_vm0, %v1745_v10, 0  ;;  %v1736_v27 = vld [vmem:[#allocation2 + $0x20] sm:$0xff]  ;;  %v1737_v29 = vld [vmem:[#allocation2 + $0x28] sm:$0xff] }
  0x11   :  { %v226_v9 = vsel %vm179_vm0, %v1746_v8, 0  ;;  %v1734_v30 = vld [vmem:[#allocation2 + $0x10] sm:$0xff]  ;;  %v1738_v31 = vld [vmem:[#allocation2 + $0x38] sm:$0xff] }
  0x12   :  { %228 = vmatpush.bf16.xpose.msra.mxu0 %v226_v9  ;;  %1810 = vmatpush.bf16.xpose.msra.mxu2 %v226_v9 }
  0x1a   :  { %229 = vmatpush.bf16.xpose.msra.mxu0 %v223_v11  ;;  %1811 = vmatpush.bf16.xpose.msra.mxu2 %v223_v11 }
  0x22   :  { %230 = vmatpush.bf16.xpose.msra.mxu0 %v220_v13  ;;  %1812 = vmatpush.bf16.xpose.msra.mxu2 %v220_v13 }
  0x2a   :  { %231 = vmatpush.bf16.xpose.msra.mxu0 %v217_v15  ;;  %1813 = vmatpush.bf16.xpose.msra.mxu2 %v217_v15 }
  0x32   :  { %232 = vmatpush.bf16.xpose.msra.mxu0 %v214_v17  ;;  %1814 = vmatpush.bf16.xpose.msra.mxu2 %v214_v17 }
  0x3a   :  { %233 = vmatpush.bf16.xpose.msra.mxu0 %v211_v19  ;;  %1815 = vmatpush.bf16.xpose.msra.mxu2 %v211_v19 }
  0x42   :  { %234 = vmatpush.bf16.xpose.msra.mxu0 %v208_v21  ;;  %1816 = vmatpush.bf16.xpose.msra.mxu2 %v208_v21 }
  0x4a   :  { %235 = vmatpush.bf16.xpose.msra.mxu0 %v205_v23  ;;  %1817 = vmatpush.bf16.xpose.msra.mxu2 %v205_v23 }
  0x51   :  { %1657 = vmatmul.msk.bf16.vlgmr.msra.gmra.mxu0 %vm179_vm0, %v1731_v24  ;;  %1661 = vmatmul.msk.bf16.vlgmr.msra.gmra.mxu2 %vm179_vm0, %v1735_v25 }
  0x61   :  { %1658 = vmatmul.msk.bf16.gmra.mxu0 %vm179_vm0, %v1732_v26  ;;  %1662 = vmatmul.msk.bf16.gmra.mxu2 %vm179_vm0, %v1736_v27 }
  0x71   :  { %1659 = vmatmul.msk.bf16.gmra.mxu0 %vm179_vm0, %v1733_v28  ;;  %1663 = vmatmul.msk.bf16.gmra.mxu2 %vm179_vm0, %v1737_v29 }
  0x81   :  { %1660 = vmatmul.msk.bf16.gmra.mxu0 %vm179_vm0, %v1734_v30  ;;  %1664 = vmatmul.msk.bf16.gmra.mxu2 %vm179_vm0, %v1738_v31 }
  0xce   :  { %v1975_v32 = vpop.f32.mrf.mxu0 }
  0xcf   :  { %v277_v57 = vmul.f32 %v1975_v32, %v1975_v32 }
  0xd4   :  { %v1977_v33 = vpop.f32.mrf.mxu2 }
  0xd5   :  { %v285_v58 = vmul.f32 %v1977_v33, %v1977_v33 }
  0xd6   :  { %v1979_v34 = vpop.f32.mrf.mxu0 }
  0xd7   :  { %v278_v63 = vmul.f32 %v1979_v34, %v1979_v34 }
  0xdc   :  { %v1981_v35 = vpop.f32.mrf.mxu2 }
  0xdd   :  { %v286_v51 = vmul.f32 %v1981_v35, %v1981_v35 }
  0xde   :  { %v1983_v36 = vpop.f32.mrf.mxu0 }
  0xdf   :  { %v279_v62 = vmul.f32 %v1983_v36, %v1983_v36 }
  0xe4   :  { %v1985_v37 = vpop.f32.mrf.mxu2 }
  0xe5   :  { %v287_v38 = vmul.f32 %v1985_v37, %v1985_v37 }
  0xe6   :  { %v1989_v39 = vpop.f32.mrf.mxu0 }
  0xe7   :  { %313 = vadd.xlane.f32.xlu2 %v287_v38  ;;  %v280_v59 = vmul.f32 %v1989_v39, %v1989_v39 }
  0xec   :  { %v1991_v40 = vpop.f32.mrf.mxu2 }
  0xed   :  { %v288_v41 = vmul.f32 %v1991_v40, %v1991_v40 }
  0xee   :  { %v1995_v42 = vpop.f32.mrf.mxu0 }
  0xef   :  { %315 = vadd.xlane.f32.xlu2 %v288_v41  ;;  %v281_v54 = vmul.f32 %v1995_v42, %v1995_v42 }
  0xf4   :  { %v1997_v43 = vpop.f32.mrf.mxu2 }
  0xf5   :  { %v289_v44 = vmul.f32 %v1997_v43, %v1997_v43 }
  0xf6   :  { %v2001_v45 = vpop.f32.mrf.mxu0 }
  0xf7   :  { %317 = vadd.xlane.f32.xlu1 %v289_v44  ;;  %v282_v53 = vmul.f32 %v2001_v45, %v2001_v45 }
  0xfc   :  { %v2003_v46 = vpop.f32.mrf.mxu2 }
  0xfd   :  { %v290_v47 = vmul.f32 %v2003_v46, %v2003_v46 }
  0xfe   :  { %v2007_v48 = vpop.f32.mrf.mxu0 }
  0xff   :  { %319 = vadd.xlane.f32.xlu1 %v290_v47  ;;  %v283_v49 = vmul.f32 %v2007_v48, %v2007_v48 }
 0x101   :  { %305 = vadd.xlane.f32.xlu2 %v283_v49 }
 0x104   :  { %v2011_v50 = vpop.f32.mrf.mxu2 }
 0x105   :  { %v291_v52 = vmul.f32 %v2011_v50, %v2011_v50 }
 0x106   :  { %v2031_v60 = vpop.f32.mrf.mxu0 }
 0x107   :  { %311 = vadd.xlane.f32.xlu1 %v286_v51  ;;  %321 = vadd.xlane.f32.xlu0 %v291_v52  ;;  %v284_v61 = vmul.f32 %v2031_v60, %v2031_v60 }
 0x109   :  { %303 = vadd.xlane.f32.xlu2 %v282_v53 }
 0x10c   :  { %v2021_v55 = vpop.f32.mrf.mxu2 }
 0x10d   :  { %v292_v56 = vmul.f32 %v2021_v55, %v2021_v55 }
 0x10f   :  { %323 = vadd.xlane.f32.xlu0 %v292_v56  ;;  %301 = vadd.xlane.f32.xlu1 %v281_v54 }
 0x111   :  { %293 = vadd.xlane.f32.xlu2 %v277_v57 }
 0x117   :  { %309 = vadd.xlane.f32.xlu0 %v285_v58  ;;  %299 = vadd.xlane.f32.xlu1 %v280_v59 }
 0x11f   :  { %307 = vadd.xlane.f32.xlu0 %v284_v61 }
 0x127   :  { %297 = vadd.xlane.f32.xlu0 %v279_v62 }
 0x12f   :  { %295 = vadd.xlane.f32.xlu0 %v278_v63 }
 0x15a   :  { %v314_v0 = vpop.xlane.xlu2 %313 }
 0x15b   :  { %v335_v1 = vmax.f32 %v314_v0, 1e-24 }
 0x15d   :  { %1841 = vrsqrt.f32 %v335_v1  ;;  %vm447_vm2 = vweird.f32 %v335_v1 }
 0x162   :  { %v316_v2 = vpop.xlane.xlu2 %315 }
 0x163   :  { %v1842_v3 = vpop.eup %1841  ;;  %v336_v4 = vmax.f32 %v316_v2, 1e-24 }
 0x164   :  { %v442_v5 = vmul.f32 %v1842_v3, %v335_v1  ;;  %vm448_vm1 = vweird.f32 %v1842_v3 }
 0x165   :  { %1843 = vrsqrt.f32 %v336_v4  ;;  %vm449_vm3 = vmor %vm447_vm2, %vm448_vm1  ;;  %vm457_vm5 = vweird.f32 %v336_v4 }
 0x166   :  { %v443_v6 = vmul.f32 %v1842_v3, %v442_v5 }
 0x168   :  { %v444_v7 = vmul.f32 0.5, %v443_v6 }
 0x16a   :  { %v445_v8 = vsub.f32 1.5, %v444_v7  ;;  %v318_v9 = vpop.xlane.xlu1 %317 }
 0x16b   :  { %v1844_v10 = vpop.eup %1843  ;;  %v337_v11 = vmax.f32 %v318_v9, 1e-24 }
 0x16c   :  { %v452_v12 = vmul.f32 %v1844_v10, %v336_v4  ;;  %v446_v13 = vmul.f32 %v1842_v3, %v445_v8  ;;  %vm458_vm4 = vweird.f32 %v1844_v10 }
 0x16d   :  { %1845 = vrsqrt.f32 %v337_v11  ;;  %vm459_vm6 = vmor %vm457_vm5, %vm458_vm4  ;;  %vm467_vm8 = vweird.f32 %v337_v11 }
 0x16e   :  { %v453_v14 = vmul.f32 %v1844_v10, %v452_v12  ;;  %v450_v16 = vsel %vm449_vm3, %v1842_v3, %v446_v13 }
 0x16f   :  { %v511_v24 = vmul.f32 3.7796447, %v450_v16 }
 0x170   :  { %v454_v15 = vmul.f32 0.5, %v453_v14 }
 0x171   :  { %v527_v29 = vmul.f32 %v511_v24, %v1985_v37 }
 0x172   :  { %v455_v17 = vsub.f32 1.5, %v454_v15  ;;  %v320_v18 = vpop.xlane.xlu1 %319 }
 0x173   :  { %v1846_v19 = vpop.eup %1845  ;;  %v338_v20 = vmax.f32 %v320_v18, 1e-24 }
 0x174   :  { %v456_v21 = vmul.f32 %v1844_v10, %v455_v17  ;;  %v462_v22 = vmul.f32 %v1846_v19, %v337_v11  ;;  %v306_v23 = vpop.xlane.xlu2 %305  ;;  %vm468_vm7 = vweird.f32 %v1846_v19 }
 0x175   :  { %1847 = vrsqrt.f32 %v338_v20  ;;  %v2041_v38 = vmax.f32 %v306_v23, 1e-24  ;;  %vm469_vm9 = vmor %vm467_vm8, %vm468_vm7  ;;  %vm477_vm11 = vweird.f32 %v338_v20 }
 0x176   :  { %v460_v25 = vsel %vm459_vm6, %v1844_v10, %v456_v21  ;;  %v463_v26 = vmul.f32 %v1846_v19, %v462_v22 }
 0x177   :  { %v512_v27 = vmul.f32 3.7796447, %v460_v25 }
 0x178   :  { %v464_v28 = vmul.f32 0.5, %v463_v26 }
 0x179   :  { %v528_v30 = vmul.f32 %v512_v27, %v1991_v40 }
 0x17a   :  { %v465_v31 = vsub.f32 1.5, %v464_v28  ;;  %v312_v41 = vpop.xlane.xlu1 %311  ;;  %v322_v44 = vpop.xlane.xlu0 %321 }
 0x17b   :  { %v1848_v47 = vpop.eup %1847  ;;  %v1791_v49 = vpack.c.bf16 %v528_v30, %v527_v29  ;;  %v2043_v51 = vmax.f32 %v312_v41, 1e-24  ;;  %v2045_v52 = vmax.f32 %v322_v44, 1e-24 }
 0x17c   :  { %v472_v53 = vmul.f32 %v1848_v47, %v338_v20  ;;  %v304_v54 = vpop.xlane.xlu2 %303  ;;  %v466_v37 = vmul.f32 %v1846_v19, %v465_v31  ;;  %vm478_vm10 = vweird.f32 %v1848_v47 }
 0x17d   :  { %1807 = vst [vmem:[#allocation3 + $0x8] sm:$0xff] %v1791_v49   ;;  %1849 = vrsqrt.f32 %v2043_v51  ;;  %v2048_v56 = vmax.f32 %v304_v54, 1e-24  ;;  %vm479_vm12 = vmor %vm477_vm11, %vm478_vm10  ;;  %vm487_vm0 = vweird.f32 %v2045_v52  ;;  %vm437_vm10 = vweird.f32 %v2043_v51 }
 0x17e   :  { %v473_v40 = vmul.f32 %v1848_v47, %v472_v53  ;;  %1851 = vrsqrt.f32 %v2041_v38  ;;  %v470_v58 = vsel %vm469_vm9, %v1846_v19, %v466_v37  ;;  %vm407_vm9 = vweird.f32 %v2041_v38 }
 0x17f   :  { %1853 = vrsqrt.f32 %v2045_v52  ;;  %v513_v5 = vmul.f32 3.7796447, %v470_v58  ;;  %vm397_vm14 = vweird.f32 %v2048_v56 }
 0x180   :  { %v474_v57 = vmul.f32 0.5, %v473_v40  ;;  %1855 = vrsqrt.f32 %v2048_v56 }
 0x181   :  { %v529_v14 = vmul.f32 %v513_v5, %v1997_v43 }
 0x182   :  { %v475_v59 = vsub.f32 1.5, %v474_v57  ;;  %v324_v61 = vpop.xlane.xlu0 %323  ;;  %v302_v62 = vpop.xlane.xlu1 %301 }
 0x183   :  { %v2053_v63 = vpop.eup %1849  ;;  %v2055_v0 = vmax.f32 %v324_v61, 1e-24  ;;  %v2059_v3 = vmax.f32 %v302_v62, 1e-24 }
 0x184   :  { %v2057_v1 = vpop.eup %1851  ;;  %v476_v2 = vmul.f32 %v1848_v47, %v475_v59  ;;  %v432_v6 = vmul.f32 %v2053_v63, %v2043_v51  ;;  %v294_v28 = vpop.xlane.xlu2 %293  ;;  %vm438_vm8 = vweird.f32 %v2053_v63 }
 0x185   :  { %v2061_v4 = vpop.eup %1853  ;;  %1857 = vrsqrt.f32 %v2055_v0  ;;  %v402_v12 = vmul.f32 %v2057_v1, %v2041_v38  ;;  %v2093_v49 = vmax.f32 %v294_v28, 1e-24  ;;  %vm497_vm4 = vweird.f32 %v2055_v0 }
 0x186   :  { %v2066_v7 = vpop.eup %1855  ;;  %v480_v8 = vsel %vm479_vm12, %v1848_v47, %v476_v2  ;;  %v482_v9 = vmul.f32 %v2061_v4, %v2045_v52  ;;  %1859 = vrsqrt.f32 %v2059_v3  ;;  %v433_v16 = vmul.f32 %v2053_v63, %v432_v6 }
 0x187   :  { %v514_v10 = vmul.f32 3.7796447, %v480_v8  ;;  %v392_v11 = vmul.f32 %v2066_v7, %v2048_v56  ;;  %v403_v43 = vmul.f32 %v2057_v1, %v402_v12  ;;  %vm488_vm13 = vweird.f32 %v2061_v4 }
 0x188   :  { %v483_v13 = vmul.f32 %v2061_v4, %v482_v9  ;;  %v434_v27 = vmul.f32 0.5, %v433_v16  ;;  %vm398_vm15 = vweird.f32 %v2066_v7  ;;  %vm2095_vm1 = vmor %vm487_vm0, %vm488_vm13  ;;  %vm387_vm5 = vweird.f32 %v2059_v3 }
 0x189   :  { %v530_v15 = vmul.f32 %v514_v10, %v2003_v46  ;;  %v393_v17 = vmul.f32 %v2066_v7, %v392_v11  ;;  %v404_v53 = vmul.f32 0.5, %v403_v43  ;;  %vm2103_vm2 = vmor %vm397_vm14, %vm398_vm15  ;;  %vm408_vm11 = vweird.f32 %v2057_v1 }
 0x18a   :  { %v484_v18 = vmul.f32 0.5, %v483_v13  ;;  %v310_v19 = vpop.xlane.xlu0 %309  ;;  %v300_v24 = vpop.xlane.xlu1 %299  ;;  %v435_v54 = vsub.f32 1.5, %v434_v27  ;;  %vm2128_vm13 = vmor %vm437_vm10, %vm438_vm8 }
 0x18b   :  { %v1858_v20 = vpop.eup %1857  ;;  %v1796_v21 = vpack.c.bf16 %v530_v15, %v529_v14  ;;  %v394_v22 = vmul.f32 0.5, %v393_v17  ;;  %v2080_v23 = vmax.f32 %v310_v19, 1e-24  ;;  %v2087_v41 = vmax.f32 %v300_v24, 1e-24 }
 0x18c   :  { %v485_v25 = vsub.f32 1.5, %v484_v18  ;;  %v492_v26 = vmul.f32 %v1858_v20, %v2055_v0  ;;  %v1860_v29 = vpop.eup %1859  ;;  %vm498_vm3 = vweird.f32 %v1858_v20  ;;  %v436_v0 = vmul.f32 %v2053_v63, %v435_v54 }
 0x18d   :  { %1808 = vst [vmem:[#allocation3 + $0x30] sm:$0xff] %v1796_v21   ;;  %v395_v46 = vsub.f32 1.5, %v394_v22  ;;  %1861 = vrsqrt.f32 %v2080_v23  ;;  %v382_v44 = vmul.f32 %v1860_v29, %v2059_v3  ;;  %vm388_vm6 = vweird.f32 %v1860_v29  ;;  %vm499_vm7 = vmor %vm497_vm4, %vm498_vm3 }
 0x18e   :  { %v486_v30 = vmul.f32 %v2061_v4, %v485_v25  ;;  %v493_v31 = vmul.f32 %v1858_v20, %v492_v26  ;;  %1863 = vrsqrt.f32 %v2087_v41  ;;  %v405_v15 = vsub.f32 1.5, %v404_v53  ;;  %vm389_vm12 = vmor %vm387_vm5, %vm388_vm6 }
 0x18f   :  { %v396_v40 = vmul.f32 %v2066_v7, %v395_v46  ;;  %v383_v57 = vmul.f32 %v1860_v29, %v382_v44  ;;  %1865 = vrsqrt.f32 %v2093_v49  ;;  %v440_v3 = vsel %vm2128_vm13, %v2053_v63, %v436_v0 }
 0x190   :  { %v494_v47 = vmul.f32 0.5, %v493_v31  ;;  %v490_v56 = vsel %vm2095_vm1, %v2061_v4, %v486_v30  ;;  %vm427_vm15 = vweird.f32 %v2080_v23  ;;  %v406_v63 = vmul.f32 %v2057_v1, %v405_v15  ;;  %vm2157_vm1 = vmor %vm407_vm9, %vm408_vm11 }
 0x191   :  { %v384_v62 = vmul.f32 0.5, %v383_v57  ;;  %v515_v6 = vmul.f32 3.7796447, %v490_v56  ;;  %v400_v8 = vsel %vm2103_vm2, %v2066_v7, %v396_v40  ;;  %v510_v30 = vmul.f32 3.7796447, %v440_v3 }
 0x192   :  { %v495_v52 = vsub.f32 1.5, %v494_v47  ;;  %v308_v59 = vpop.xlane.xlu0 %307  ;;  %v506_v7 = vmul.f32 3.7796447, %v400_v8  ;;  %v410_v37 = vsel %vm2157_vm1, %v2057_v1, %v406_v63  ;;  %vm377_vm6 = vweird.f32 %v2087_v41 }
 0x193   :  { %v1862_v61 = vpop.eup %1861  ;;  %v2110_v2 = vmax.f32 %v308_v59, 1e-24  ;;  %v385_v9 = vsub.f32 1.5, %v384_v62  ;;  %v531_v18 = vmul.f32 %v515_v6, %v2011_v50  ;;  %v526_v40 = vmul.f32 %v510_v30, %v1981_v35 }
 0x194   :  { %v496_v5 = vmul.f32 %v1858_v20, %v495_v52  ;;  %v422_v4 = vmul.f32 %v1862_v61, %v2080_v23  ;;  %v2122_v14 = vpop.eup %1863  ;;  %vm428_vm14 = vweird.f32 %v1862_v61  ;;  %v522_v27 = vmul.f32 %v506_v7, %v2001_v45 }
 0x195   :  { %1867 = vrsqrt.f32 %v2110_v2  ;;  %v386_v13 = vmul.f32 %v1860_v29, %v385_v9  ;;  %v2136_v21 = vpop.eup %1865  ;;  %vm429_vm0 = vmor %vm427_vm15, %vm428_vm14  ;;  %vm417_vm2 = vweird.f32 %v2110_v2  ;;  %v507_v1 = vmul.f32 3.7796447, %v410_v37 }
 0x196   :  { %v500_v10 = vsel %vm499_vm7, %v1858_v20, %v496_v5  ;;  %v423_v11 = vmul.f32 %v1862_v61, %v422_v4  ;;  %v372_v20 = vmul.f32 %v2122_v14, %v2087_v41  ;;  %v342_v31 = vmul.f32 %v2136_v21, %v2093_v49 }
 0x197   :  { %v516_v12 = vmul.f32 3.7796447, %v500_v10  ;;  %v390_v19 = vsel %vm389_vm12, %v1860_v29, %v386_v13  ;;  %vm378_vm5 = vweird.f32 %v2122_v14  ;;  %v523_v10 = vmul.f32 %v507_v1, %v2007_v48 }
 0x198   :  { %v424_v16 = vmul.f32 0.5, %v423_v11  ;;  %v505_v22 = vmul.f32 3.7796447, %v390_v19  ;;  %v373_v50 = vmul.f32 %v2122_v14, %v372_v20  ;;  %v343_v57 = vmul.f32 %v2136_v21, %v342_v31  ;;  %vm379_vm7 = vmor %vm377_vm6, %vm378_vm5 }
 0x199   :  { %v532_v51 = vmul.f32 %v516_v12, %v2021_v55  ;;  %vm348_vm11 = vweird.f32 %v2136_v21  ;;  %vm347_vm12 = vweird.f32 %v2093_v49  ;;  %v1911_v63 = vmov 0  }
 0x19a   :  { %v425_v24 = vsub.f32 1.5, %v424_v16  ;;  %v298_v25 = vpop.xlane.xlu0 %297  ;;  %v521_v46 = vmul.f32 %v505_v22, %v1995_v42  ;;  %v374_v44 = vmul.f32 0.5, %v373_v50  ;;  %v344_v8 = vmul.f32 0.5, %v343_v57  ;;  %vm349_vm13 = vmor %vm347_vm12, %vm348_vm11  ;;  %v1760_v50 = vld [vmem:[#allocation3 + $0x8] sm:$0xff]  ;;  %1834 = vset.pattern.permute.xlu1 %v1911_v63  ;;  %1835 = vset.pattern.permute.xlu2 %v1911_v63  ;;  %v1837_v57 = vld [vmem:[%s2208_s1] ss:$0 sm:$0xff] }
 0x19b   :  { %v1868_v26 = vpop.eup %1867  ;;  %v1801_v43 = vpack.c.bf16 %v532_v51, %v531_v18  ;;  %v2143_v55 = vmax.f32 %v298_v25, 1e-24  ;;  %v1761_v51 = vld [vmem:[#allocation3 + $0x30] sm:$0xff]  ;;  %1836 = vset.pattern.permute.xlu0 %v1911_v63  ;;  %v1912_v37 = vmov -1e+30  }
 0x19c   :  { %v426_v28 = vmul.f32 %v1862_v61, %v425_v24  ;;  %v412_v29 = vmul.f32 %v1868_v26, %v2110_v2  ;;  %v1776_v45 = vpack.c.bf16 %v522_v27, %v521_v46  ;;  %v375_v56 = vsub.f32 1.5, %v374_v44  ;;  %570 = vst [vmem:[#allocation5] sm:$0x1] %v1912_v37 }
 0x19d   :  { %1809 = vst [vmem:[#allocation3 + $0x38] sm:$0xff] %v1801_v43   ;;  %1869 = vrsqrt.f32 %v2143_v55  ;;  %vm418_vm3 = vweird.f32 %v1868_v26  ;;  %v345_v12 = vsub.f32 1.5, %v344_v8  ;;  %vm367_vm9 = vweird.f32 %v2143_v55 }
 0x19e   :  { %v430_v23 = vsel %vm429_vm0, %v1862_v61, %v426_v28  ;;  %v413_v47 = vmul.f32 %v1868_v26, %v412_v29  ;;  %1804 = vst [vmem:[#allocation3 + $0x10] sm:$0xff] %v1776_v45   ;;  %vm419_vm4 = vmor %vm417_vm2, %vm418_vm3  ;;  %v776_v29 = vld [vmem:[%s2207_s0] sm:$0xff] }
 0x19f   :  { %v509_v53 = vmul.f32 3.7796447, %v430_v23  ;;  %v346_v48 = vmul.f32 %v2136_v21, %v345_v12  ;;  %827 = vperm.xlu1 %1834, %v776_v29   ;;  %1127 = vperm.xlu2 %1835, %v776_v29   ;;  %v1752_v23 = vld [vmem:[#allocation3 + $0x8] sm:$0xff] }
 0x1a0   :  { %v414_v54 = vmul.f32 0.5, %v413_v47  ;;  %v1753_v47 = vld [vmem:[#allocation3 + $0x30] sm:$0xff] }
 0x1a1   :  { %v525_v38 = vmul.f32 %v509_v53, %v1977_v33  ;;  %v376_v33 = vmul.f32 %v2122_v14, %v375_v56  ;;  %v350_v24 = vsel %vm349_vm13, %v2136_v21, %v346_v48 }
 0x1a2   :  { %v415_v58 = vsub.f32 1.5, %v414_v54  ;;  %v296_v52 = vpop.xlane.xlu0 %295 }
 0x1a3   :  { %v1870_v59 = vpop.eup %1869  ;;  %v1786_v61 = vpack.c.bf16 %v526_v40, %v525_v38  ;;  %v326_v62 = vmax.f32 %v296_v52, 1e-24  ;;  %v380_v13 = vsel %vm379_vm7, %v2122_v14, %v376_v33  ;;  %v1913_v40 = vmov 0.0  }
 0x1a4   :  { %v416_v5 = vmul.f32 %v1868_v26, %v415_v58  ;;  %v362_v4 = vmul.f32 %v1870_v59, %v2143_v55  ;;  %v1762_v6 = vld [vmem:[#allocation3 + $0x38] sm:$0xff]  ;;  %vm368_vm8 = vweird.f32 %v1870_v59  ;;  %v504_v19 = vmul.f32 3.7796447, %v380_v13  ;;  %571 = vst [vmem:[#allocation6] sm:$0x1] %v1913_v40 }
 0x1a5   :  { %1806 = vst [vmem:[#allocation3 + $0x28] sm:$0xff] %v1786_v61   ;;  %1871 = vrsqrt.f32 %v326_v62  ;;  %708 = vmatpush.bf16.xpose.msra.mxu1 %v1762_v6  ;;  %1818 = vmatpush.bf16.xpose.msra.mxu3 %v1762_v6  ;;  %vm369_vm10 = vmor %vm367_vm9, %vm368_vm8  ;;  %vm357_vm15 = vweird.f32 %v326_v62  ;;  %v501_v55 = vmul.f32 3.7796447, %v350_v24  ;;  %v1749_v44 = vld [vmem:[#allocation3 + $0x10] sm:$0xff]  ;;  %v1754_v54 = vld [vmem:[#allocation3 + $0x38] sm:$0xff]  ;;  %vm57_vm7 = vcmask 0  }
 0x1a6   :  { %v420_v35 = vsel %vm419_vm4, %v1868_v26, %v416_v5  ;;  %v363_v2 = vmul.f32 %v1870_v59, %v362_v4  ;;  %v520_v3 = vmul.f32 %v504_v19, %v1989_v39  ;;  %58 = vst.msk [vmem:[#allocation7] sm:$0x1] %vm57_vm7, %v1913_v40 }
 0x1a7   :  { %v508_v9 = vmul.f32 3.7796447, %v420_v35  ;;  %v517_v46 = vmul.f32 %v501_v55, %v1975_v32  ;;  %v1757_v32 = vld [vmem:[#allocation3 + $0x10] sm:$0xff]  ;;  %59 = vst.msk [vmem:[#allocation8] sm:$0x1] %vm57_vm7, %v1913_v40 }
 0x1a8   :  { %v364_v0 = vmul.f32 0.5, %v363_v2 }
 0x1a9   :  { %v524_v11 = vmul.f32 %v508_v9, %v2031_v60 }
 0x1aa   :  { %v365_v15 = vsub.f32 1.5, %v364_v0 }
 0x1ab   :  { %v1872_v7 = vpop.eup %1871  ;;  %v1781_v16 = vpack.c.bf16 %v524_v11, %v523_v10  ;;  %v992_v10 = vld [vmem:[#allocation5] sm:$0x1]  ;;  %v1064_v55 = vld [vmem:[#allocation6] sm:$0x1] }
 0x1ac   :  { %v366_v17 = vmul.f32 %v1870_v59, %v365_v15  ;;  %v352_v18 = vmul.f32 %v1872_v7, %v326_v62  ;;  %vm358_vm14 = vweird.f32 %v1872_v7  ;;  %v1759_v28 = vld [vmem:[#allocation3 + $0x28] sm:$0xff] }
 0x1ad   :  { %1805 = vst [vmem:[#allocation3 + $0x20] sm:$0xff] %v1781_v16   ;;  %709 = vmatpush.bf16.xpose.msra.mxu1 %v1761_v51  ;;  %1819 = vmatpush.bf16.xpose.msra.mxu3 %v1761_v51  ;;  %vm359_vm0 = vmor %vm357_vm15, %vm358_vm14  ;;  %v1751_v42 = vld [vmem:[#allocation3 + $0x28] sm:$0xff] }
 0x1ae   :  { %v370_v60 = vsel %vm369_vm10, %v1870_v59, %v366_v17  ;;  %v353_v41 = vmul.f32 %v1872_v7, %v352_v18 }
 0x1af   :  { %v503_v14 = vmul.f32 3.7796447, %v370_v60 }
 0x1b0   :  { %v354_v20 = vmul.f32 0.5, %v353_v41 }
 0x1b1   :  { %v519_v22 = vmul.f32 %v503_v14, %v1983_v36 }
 0x1b2   :  { %v355_v25 = vsub.f32 1.5, %v354_v20 }
 0x1b3   :  { %v1771_v26 = vpack.c.bf16 %v520_v3, %v519_v22 }
 0x1b4   :  { %v356_v43 = vmul.f32 %v1872_v7, %v355_v25  ;;  %v1758_v21 = vld [vmem:[#allocation3 + $0x20] sm:$0xff] }
 0x1b5   :  { %1803 = vst [vmem:[#allocation3 + $0x18] sm:$0xff] %v1771_v26   ;;  %710 = vmatpush.bf16.xpose.msra.mxu1 %v1760_v50  ;;  %1820 = vmatpush.bf16.xpose.msra.mxu3 %v1760_v50  ;;  %v1750_v53 = vld [vmem:[#allocation3 + $0x20] sm:$0xff] }
 0x1b6   :  { %v360_v27 = vsel %vm359_vm0, %v1872_v7, %v356_v43 }
 0x1b7   :  { %v502_v49 = vmul.f32 3.7796447, %v360_v27 }
 0x1b9   :  { %v518_v39 = vmul.f32 %v502_v49, %v1979_v34 }
 0x1bb   :  { %v1766_v36 = vpack.c.bf16 %v518_v39, %v517_v46 }
 0x1bc   :  { %v1756_v34 = vld [vmem:[#allocation3 + $0x18] sm:$0xff] }
 0x1bd   :  { %1767 = vst [vmem:[#allocation3] sm:$0xff] %v1766_v36   ;;  %711 = vmatpush.bf16.xpose.msra.mxu1 %v1759_v28  ;;  %1821 = vmatpush.bf16.xpose.msra.mxu3 %v1759_v28  ;;  %v1748_v45 = vld [vmem:[#allocation3 + $0x18] sm:$0xff] }
 0x1c4   :  { %v1755_v30 = vld [vmem:[#allocation3] sm:$0xff] }
 0x1c5   :  { %712 = vmatpush.bf16.xpose.msra.mxu1 %v1758_v21  ;;  %1822 = vmatpush.bf16.xpose.msra.mxu3 %v1758_v21  ;;  %v1747_v31 = vld [vmem:[#allocation3] sm:$0xff] }
 0x1cd   :  { %713 = vmatpush.bf16.xpose.msra.mxu1 %v1757_v32  ;;  %1823 = vmatpush.bf16.xpose.msra.mxu3 %v1757_v32  ;;  %v792_v32 = vlaneseq }
 0x1d5   :  { %714 = vmatpush.bf16.xpose.msra.mxu1 %v1756_v34  ;;  %1824 = vmatpush.bf16.xpose.msra.mxu3 %v1756_v34 }
 0x1dd   :  { %715 = vmatpush.bf16.xpose.msra.mxu1 %v1755_v30  ;;  %1825 = vmatpush.bf16.xpose.msra.mxu3 %v1755_v30 }
 0x1e4   :  { %716 = vmatmul.bf16.vlgmr.msra.gmra.mxu1 %v1747_v31  ;;  %736 = vmatmul.bf16.vlgmr.msra.gmra.mxu3 %v1751_v42  ;;  %v793_v42 = vshrl.u32 %v792_v32, 7 }
 0x1f4   :  { %721 = vmatmul.bf16.gmra.mxu1 %v1748_v45  ;;  %741 = vmatmul.bf16.gmra.mxu3 %v1752_v23  ;;  %v1839_v45 = vld [vmem:[%s2208_s1] ss:$0 sm:$0xff]  ;;  %v1192_v23 = vand.u32 127, %v792_v32 }
 0x1f6   :  { %vm1195_vm2 = vcmp.ne.s32.totalorder %v793_v42, %v1192_v23  ;;  %vm1243_vm5 = vcmp.lt.s32.totalorder %v1192_v23, 8 }
 0x204   :  { %726 = vmatmul.bf16.gmra.mxu1 %v1749_v44  ;;  %746 = vmatmul.bf16.gmra.mxu3 %v1753_v47  ;;  %v1128_v47 = vpop.permute.xlu2 %1127 }
 0x205   :  { %vm1175_vm3 = vcmp.eq.s32.totalorder %v1128_v47, %v1839_v45 }
 0x206   :  { %vm1211_vm4 = vmand %vm1175_vm3, %vm1195_vm2 }
 0x207   :  { %vm1294_vm6 = vmand %vm1211_vm4, %vm1243_vm5 }
 0x211   :  { %v828_v38 = vpop.permute.xlu1 %827 }
 0x212   :  { %vm875_vm1 = vcmp.ne.s32.totalorder %v828_v38, %v1837_v57  ;;  %v1729_v38 = vsel %vm1294_vm6, 1.0, %v1913_v40 }
 0x214   :  { %731 = vmatmul.bf16.gmra.mxu1 %v1750_v53  ;;  %751 = vmatmul.bf16.gmra.mxu3 %v1754_v54 }
 0x261   :  { %v717_v56 = vpop.f32.mrf.mxu1 }
 0x262   :  { %v955_v58 = vsel %vm875_vm1, %v717_v56, -1e+30 }
 0x263   :  { %v971_v52 = vmax.f32 %v955_v58, -1e+30 }
 0x265   :  { %v975_v59 = vmax.f32 %v971_v52, -1e+30 }
 0x267   :  { %v979_v61 = vmax.f32 %v975_v59, -1e+30  ;;  %v737_v62 = vpop.f32.mrf.mxu3 }
 0x269   :  { %v983_v5 = vmax.f32 %v979_v61, -1e+30  ;;  %v719_v4 = vpop.f32.mrf.mxu1 }
 0x26b   :  { %v985_v6 = vmax.f32 %v983_v5, -1e+30 }
 0x26d   :  { %v986_v1 = vrot.slane %v985_v6, 4 }
 0x26f   :  { %v987_v8 = vmax.f32 %v985_v6, %v986_v1  ;;  %v739_v33 = vpop.f32.mrf.mxu3 }
 0x271   :  { %v988_v35 = vrot.slane %v987_v8, 2  ;;  %v722_v2 = vpop.f32.mrf.mxu1 }
 0x273   :  { %v989_v9 = vmax.f32 %v987_v8, %v988_v35 }
 0x275   :  { %v990_v0 = vrot.slane %v989_v9, 1 }
 0x277   :  { %v991_v11 = vmax.f32 %v989_v9, %v990_v0  ;;  %v742_v12 = vpop.f32.mrf.mxu3  ;;  %v1446_v9 = vld [vmem:[#allocation7] sm:$0x1] }
 0x279   :  { %v993_v13 = vmax.f32 %v992_v10, %v991_v11  ;;  %v724_v15 = vpop.f32.mrf.mxu1 }
 0x27b   :  { %v998_v7 = vperm.slane %v993_v13, 0  ;;  %1089 = vst [vmem:[#allocation5] sm:$0x1] %v993_v13  ;;  %v994_v19 = vsub.f32 %v992_v10, %v993_v13  ;;  %v1475_v10 = vld [vmem:[#allocation8] sm:$0x1] }
 0x27d   :  { %v1000_v16 = vsub.f32 %v717_v56, %v998_v7  ;;  %v995_v48 = vmul.f32 1.442695, %v994_v19 }
 0x27f   :  { %v1016_v17 = vmul.f32 1.442695, %v1000_v16  ;;  %v744_v18 = vpop.f32.mrf.mxu3 }
 0x281   :  { %1873 = vpow2.f32 %v1016_v17  ;;  %v727_v51 = vpop.f32.mrf.mxu1 }
 0x282   :  { %1875 = vpow2.f32 %v995_v48  ;;  %v1838_v25 = vld [vmem:[#allocation5] ss:$0 sm:$0xff] }
 0x283   :  { %v1315_v49 = vsub.f32 %v1838_v25, %v717_v56 }
 0x285   :  { %v1331_v21 = vmul.f32 1.442695, %v1315_v49 }
 0x287   :  { %v1874_v60 = vpop.eup %1873  ;;  %v747_v41 = vpop.f32.mrf.mxu3  ;;  %1877 = vpow2.f32 %v1331_v21 }
 0x288   :  { %v1048_v14 = vsel %vm875_vm1, %v1874_v60, 0.0  ;;  %v1876_v50 = vpop.eup %1875 }
 0x289   :  { %v1081_v20 = vrot.slane %v1048_v14, 4  ;;  %v729_v3 = vpop.f32.mrf.mxu1  ;;  %v1065_v39 = vmul.f32 %v1876_v50, %v1064_v55 }
 0x28b   :  { %v1082_v22 = vadd.f32 %v1081_v20, %v1048_v14 }
 0x28d   :  { %v1083_v24 = vrot.slane %v1082_v22, 2  ;;  %v1878_v30 = vpop.eup %1877 }
 0x28f   :  { %v1084_v26 = vadd.f32 %v1083_v24, %v1082_v22  ;;  %v749_v43 = vpop.f32.mrf.mxu3 }
 0x291   :  { %v1085_v27 = vrot.slane %v1084_v26, 1  ;;  %v732_v46 = vpop.f32.mrf.mxu1 }
 0x293   :  { %v1086_v36 = vadd.f32 %v1085_v27, %v1084_v26 }
 0x295   :  { %v1087_v28 = vadd.f32 %v1086_v36, %v1065_v39 }
 0x297   :  { %1088 = vst [vmem:[#allocation6] sm:$0x1] %v1087_v28  ;;  %v752_v29 = vpop.f32.mrf.mxu3 }
 0x299   :  { %v734_v63 = vpop.f32.mrf.mxu1 }
 0x29e   :  { %v1840_v34 = vld [vmem:[#allocation6] ss:$0 sm:$0xff] }
 0x29f   :  { %v754_v31 = vpop.f32.mrf.mxu3  ;;  %v1366_v44 = vmul.f32 %v1878_v30, %v1840_v34 }
 0x2a1   :  { %v1382_v53 = vadd.f32 1.0, %v1366_v44 }
 0x2a3   :  { %1879 = vlog2.f32 %v1382_v53 }
 0x2a9   :  { %v1880_v54 = vpop.eup %1879 }
 0x2aa   :  { %v1399_v37 = vmul.f32 0.6931472, %v1880_v54 }
 0x2ac   :  { %v1430_v57 = vsel %vm1294_vm6, %v1399_v37, 0.0 }
 0x2ad   :  { %1462 = vadd.xlane.f32.xlu0 %v1430_v57 }
 0x2b5   :  { %1523 = vadd.xlane.f32.xlu0 %v1729_v38 }
 0x320   :  { %v1463_v56 = vpop.xlane.xlu0 %1462 }
 0x321   :  { %v1464_v58 = vrot.slane %v1463_v56, 4 }
 0x323   :  { %v1465_v52 = vadd.f32 %v1464_v58, %v1463_v56 }
 0x325   :  { %v1466_v59 = vrot.slane %v1465_v52, 2 }
 0x327   :  { %v1467_v61 = vadd.f32 %v1466_v59, %v1465_v52 }
 0x328   :  { %v1524_v62 = vpop.xlane.xlu0 %1523 }
 0x329   :  { %v1525_v5 = vrot.slane %v1524_v62, 4  ;;  %v1468_v4 = vrot.slane %v1467_v61, 1 }
 0x32b   :  { %v1526_v6 = vadd.f32 %v1525_v5, %v1524_v62  ;;  %v1469_v1 = vadd.f32 %v1468_v4, %v1467_v61 }
 0x32d   :  { %v1527_v8 = vrot.slane %v1526_v6, 2  ;;  %1826 = vpush %v1469_v1 }
 0x32f   :  { %v1528_v33 = vadd.f32 %v1527_v8, %v1526_v6 }
 0x331   :  { %v1529_v35 = vrot.slane %v1528_v33, 1 }
 0x333   :  { %v1530_v2 = vadd.f32 %v1529_v35, %v1528_v33 }
 0x335   :  { %1828 = vpush %v1530_v2 }
 0x35e   :  { %s1827_s1 = spop %1826 }
 0x35f   :  { %v1471_v0 = vstv %s1827_s1 }
 0x360   :  { %v1472_v40 = vadd.f32 %v1471_v0, %v1446_v9 }
 0x362   :  { %1474 = vst.msk [vmem:[#allocation7] sm:$0x1] %vm57_vm7, %v1472_v40 }
 0x366   :  { %s1829_s5 = spop %1828 }
 0x367   :  { %v1532_v11 = vstv %s1829_s5 }
 0x368   :  { %v1533_v12 = vadd.f32 %v1532_v11, %v1475_v10 }
 0x369   :  { %v1539_v14 = vld [vmem:[#allocation7] sm:$0x1] }
 0x36a   :  { %1534 = vst.msk [vmem:[#allocation8] sm:$0x1] %vm57_vm7, %v1533_v12 }
 0x371   :  { %v1537_v13 = vld [vmem:[#allocation8] sm:$0x1] }
 0x372   :  { %v1540_v15 = vmax.f32 %v1537_v13, 1.0  ;;  %vm1538_vm12 = vcmp.gt.f32.partialorder %v1537_v13, 0.0 }
 0x374   :  { %1881 = vrcp.f32 %v1540_v15  ;;  %v1552_v18 = vand.u32 2147483648, %v1540_v15  ;;  %v1550_v19 = vand.u32 2147483647, %v1540_v15  ;;  %vm1546_vm9 = vweird.f32 %v1540_v15 }
 0x376   :  { %v1553_v60 = vor.u32 1.1754944e-38, %v1552_v18  ;;  %vm1551_vm11 = vcmp.eq.f32.partialorder %v1550_v19, 8.507059e+37 }
 0x37a   :  { %v1882_v7 = vpop.eup %1881 }
 0x37b   :  { %v1542_v16 = vmul.f32 %v1882_v7, %v1540_v15  ;;  %vm1547_vm8 = vweird.f32 %v1882_v7 }
 0x37c   :  { %vm1548_vm10 = vmor %vm1546_vm9, %vm1547_vm8 }
 0x37d   :  { %v1543_v17 = vsub.f32 1.0, %v1542_v16 }
 0x37f   :  { %v1544_v51 = vmul.f32 %v1882_v7, %v1543_v17 }
 0x381   :  { %v1545_v48 = vadd.f32 %v1882_v7, %v1544_v51 }
 0x383   :  { %v1549_v41 = vsel %vm1548_vm10, %v1882_v7, %v1545_v48 }
 0x384   :  { %v1554_v20 = vsel %vm1551_vm11, %v1553_v60, %v1549_v41 }
 0x385   :  { %v1555_v3 = vmul.f32 %v1554_v20, %v1539_v14 }
 0x387   :  { %v1556_v22 = vsel %vm1538_vm12, %v1555_v3, 0.0 }
 0x388   :  { %1558 = vst.msk [vmem:[#allocation10] sm:$0x1] %vm57_vm7, %v1556_v22 }
 0x389   :  { %1569 = dma.vmem_to_hbm [thread:$0]  %s1565_s7, 16, %s1567_s10, [#allocation11]  }
 0x38a   :  { %1909 = dma.done.wait [#allocation11], 16  }
 0x38b   :  { %1910 = vsyncadd [#allocation11], 4294967280 }
 0x38c   :  { %1574 = vsyncpa [#allocation11], 1 }
 0x38d   :  { %1575 = vsyncmov [#allocation9] }
 0x390   :  { %s1576_s11 = vpop.sfrf %1575 }
 0x391   :  { %p1730_p0 = scmp.ne.s32.totalorder %s1576_s11, 0 }
 0x393   :  { %1580 = shalt.err (%p1730_p0)  }

</bundles_post_ra>
